<compile_context>
chip_gen: v7x
topology: tpu7x:2x2x1
jax: 0.10.0
libtpu: 0.0.40
codegen_flags: <defaults>
</compile_context>

<pallas_src>
import functools

import jax
import jax.numpy as jnp
from jax.experimental import pallas as pl
from jax.experimental.pallas import tpu as pltpu


def _round_up(x, m):
    return ((x + m - 1) // m) * m


def _lsce_kernel(x_ref, t_ref, out_ref, *, eps, n_total, tile_n, sub_n, c):
    """One (TILE_N, C) row tile -> one pre-weighted partial-loss scalar.

    x_ref:   (TILE_N, C) logits (f32 or bf16) in VMEM
    t_ref:   (TILE_N, 1) int32 targets in VMEM
    out_ref: (1, 8, 128) f32 partial (lane-dense; the value is broadcast over the tile)
    """
    i = pl.program_id(0)
    n_sub = tile_n // sub_n

    # Hoisted constants (JAX does not CSE broadcasts -> build once per grid step,
    # not once per inner-loop iteration).
    ones_c = jnp.ones((c, 1), jnp.float32)                       # MXU reduction vector
    col_idx = jax.lax.broadcasted_iota(jnp.int32, (1, c), 1)     # (1, C) lane iota
    sub_iota = jax.lax.broadcasted_iota(jnp.int32, (sub_n, 1), 0)
    w_smooth = jnp.float32(eps / c)
    w_nll = jnp.float32(1.0 - eps)
    tile_row0 = i * tile_n

    def body(j, acc):
        r0 = pl.multiple_of(j * sub_n, sub_n)
        x = x_ref[pl.ds(r0, sub_n), :].astype(jnp.float32)       # (S, C) f32 math
        t = t_ref[pl.ds(r0, sub_n), :]                           # (S, 1) int32

        # Row max stays on the XLU; the three lane-axis sums go to the MXU.
        m = jnp.max(x, axis=-1, keepdims=True)                   # (S, 1)   XLU
        e = jnp.exp(x - m)                                       # (S, C)   EUP
        s = jnp.dot(e, ones_c, preferred_element_type=jnp.float32)      # (S, 1) MXU
        sum_x = jnp.dot(x, ones_c, preferred_element_type=jnp.float32)  # (S, 1) MXU
        x_tgt = jnp.where(col_idx == t, x, 0.0)                  # (S, C)   VPU select
        tgt_x = jnp.dot(x_tgt, ones_c, preferred_element_type=jnp.float32)  # (S, 1)

        lse = m + jnp.log(s)                                     # logsumexp   (S, 1)
        row_sum_logp = sum_x - c * lse                           # sum_j log_softmax
        tgt_logp = tgt_x - lse                                   # log_softmax[target]

        # Pre-weighted per-row loss; select-mask (NaN/Inf-safe) the out-of-batch
        # rows of the non-divisible last grid block.
        per_row = -(w_smooth * row_sum_logp + w_nll * tgt_logp)  # (S, 1)
        row_ids = tile_row0 + r0 + sub_iota
        per_row = jnp.where(row_ids < n_total, per_row, 0.0)
        return acc + jnp.sum(per_row, keepdims=True)             # (1, 1) sublane reduce

    acc = jax.lax.fori_loop(0, n_sub, body, jnp.zeros((1, 1), jnp.float32))
    out_ref[...] = jnp.broadcast_to(acc.reshape(1, 1, 1), (1, 8, 128))


def label_smoothing_cross_entropy(output, target, eps=0.1, reduction="mean",
                                  tile_n=None, sub_n=None):
    """output: (N, C) float logits (f32 or bf16); target: (N,) int class indices."""
    # TODO(synk): reduction='sum'/'none' branches of the PyTorch module are not implemented.
    assert reduction == "mean", "only reduction='mean' is implemented"
    assert output.ndim == 2, "expected (N, C) logits"
    n, c = output.shape
    target2d = target.astype(jnp.int32).reshape(n, 1)

    itemsize = jnp.dtype(output.dtype).itemsize
    align = 16 if itemsize == 2 else 8           # sublane packing granularity

    # ---- compute sub-tile: bounds the live (sub_n, C) f32 temporaries (~4 copies) ----
    if sub_n is None:
        sub_n = (8 * 1024 * 1024) // (4 * 4 * c)          # 4 f32 (sub_n, C) copies <= 8 MiB
        sub_n = max(align, min(512, (sub_n // align) * align))
    sub_n = min(sub_n, _round_up(n, align))
    assert sub_n % align == 0 and sub_n > 0

    # ---- generation-aware VMEM budget (v7x: 64 MiB physical; v5e/v6e: 128 MiB) ----
    try:
        vmem_cap = int(pltpu.get_tpu_info().vmem_capacity_bytes)
    except Exception:
        vmem_cap = 64 * 1024 * 1024
    vmem_budget = max(32 * 1024 * 1024, min((vmem_cap * 3) // 4, 96 * 1024 * 1024))

    # ---- DMA row tile: as large as the budget allows (amortizes ~0.35us/grid step);
    #      in-kernel temporaries are bounded by sub_n, not tile_n. ----
    if tile_n is None:
        temps = 4 * 4 * sub_n * c + (1 << 20)             # in-kernel f32 temporaries + slack
        # Double-buffered per-row bytes: logits row + (row, 1) int32 target row,
        # which pads to one 128-lane vreg row (512 B) in VMEM.
        row_bytes = 2 * c * itemsize + 2 * 512
        tile_n = max(sub_n, ((vmem_budget - temps) // row_bytes // sub_n) * sub_n)
        tile_n = min(tile_n, 16 * sub_n)                  # keep the inner fori_loop short
    else:
        assert tile_n % align == 0, "tile_n must be a multiple of the sublane packing"
        sub_n = min(sub_n, tile_n)
    if tile_n % sub_n != 0:
        # Largest multiple-of-`align` divisor of tile_n not exceeding sub_n.
        d, best = align, align
        while d <= sub_n:
            if tile_n % d == 0:
                best = d
            d += align
        sub_n = best
    tile_n = min(tile_n, _round_up(n, sub_n))             # don't tile past the batch
    assert tile_n % sub_n == 0

    n_tiles = pl.cdiv(n, tile_n)

    # TODO(synk): for vocab-scale C with tiny row tiles, add an inner 'arbitrary'
    # grid axis over C with an online logsumexp (and/or pipeline_mode=pl.Buffered(3)).
    kernel = functools.partial(_lsce_kernel, eps=float(eps), n_total=n,
                               tile_n=tile_n, sub_n=sub_n, c=c)

    partials = pl.pallas_call(
        kernel,
        out_shape=jax.ShapeDtypeStruct((n_tiles, 8, 128), jnp.float32),
        grid_spec=pltpu.PrefetchScalarGridSpec(
            num_scalar_prefetch=0,
            grid=(n_tiles,),
            in_specs=[
                pl.BlockSpec((tile_n, c), lambda i: (i, 0)),
                pl.BlockSpec((tile_n, 1), lambda i: (i, 0)),
            ],
            out_specs=pl.BlockSpec((1, 8, 128), lambda i: (i, 0, 0)),
        ),
        compiler_params=pltpu.CompilerParams(
            # Independent per-tile partial outputs (no carried accumulator) ->
            # 'parallel' lets v7x shard row tiles across its two TensorCores.
            dimension_semantics=("parallel",),
            vmem_limit_bytes=int(min(vmem_budget + (8 << 20), 120 * 1024 * 1024)),
        ),
    )(output, target2d)

    # eps-combine is already folded per row in-kernel; finish the batch mean in JAX
    # (pairwise sum over per-tile partials -> better precision than one serial f32
    #  accumulator carried across every tile).
    return jnp.sum(partials[:, 0, 0]) / n


def _reference(output, target, eps=0.1):
    # Pure-JAX reference matching the PyTorch module (reduction='mean').
    c = output.shape[-1]
    log_preds = jax.nn.log_softmax(output.astype(jnp.float32), axis=-1)
    loss = jnp.mean(-jnp.sum(log_preds, axis=-1))
    nll = jnp.mean(-jnp.take_along_axis(log_preds, target[:, None], axis=-1)[:, 0])
    return loss * eps / c + (1 - eps) * nll


if __name__ == "__main__":
    key = jax.random.PRNGKey(0)
    k1, k2 = jax.random.split(key)

    # Multi-tile, non-divisible batch: N=100, C=128, TILE_N=32 -> grid of 4 row
    # tiles; the last tile has 28 out-of-batch rows handled by the select mask.
    # SUB_N=16 exercises the inner fori_loop (2 sub-chunks per tile).
    N, C, TILE_N, SUB_N = 100, 128, 32, 16
    logits = jax.random.normal(k1, (N, C), dtype=jnp.float32)
    target = jax.random.randint(k2, (N,), 0, C, dtype=jnp.int32)

    out = label_smoothing_cross_entropy(logits, target, eps=0.1,
                                        tile_n=TILE_N, sub_n=SUB_N)
    out = jax.block_until_ready(out)
    ref = _reference(logits, target, eps=0.1)
    assert jnp.allclose(out, ref, rtol=1e-4, atol=1e-4), (out, ref)

    # Auto-sized tiles (generation-aware VMEM budget path).
    out_auto = jax.block_until_ready(
        label_smoothing_cross_entropy(logits, target, eps=0.1))
    assert jnp.allclose(out_auto, ref, rtol=1e-4, atol=1e-4), (out_auto, ref)

    # bf16 logits (halves HBM read traffic; math stays f32 inside the kernel).
    logits_bf16 = logits.astype(jnp.bfloat16)
    out_bf16 = jax.block_until_ready(
        label_smoothing_cross_entropy(logits_bf16, target, eps=0.1,
                                      tile_n=TILE_N, sub_n=SUB_N))
    ref_bf16 = _reference(logits_bf16, target, eps=0.1)
    assert jnp.allclose(out_bf16, ref_bf16, rtol=1e-3, atol=1e-3), (out_bf16, ref_bf16)

    print("KERNEL_OK")
</pallas_src>

<mosaic_0001>
module attributes {stable_mosaic.version = 11 : i64} {
  func.func @_lsce_kernel(%arg0: i32, %arg1: memref<32x128xf32, #tpu.memory_space<vmem>>, %arg2: memref<32x1xi32, #tpu.memory_space<vmem>>, %arg3: memref<1x8x128xf32, #tpu.memory_space<vmem>>) attributes {dimension_semantics = [#tpu.dimension_semantics<parallel>], iteration_bounds = array<i64: 4>, scalar_prefetch = 0 : i64, scratch_operands = 0 : i64, tpu.core_type = #tpu.core_type<tc>, window_params = [{transform_indices = @transform_0, window_bounds = array<i64: 32, 128>}, {transform_indices = @transform_1, window_bounds = array<i64: 32, 1>}, {transform_indices = @transform_2, window_bounds = array<i64: 1, 8, 128>}]} {
    %cst = arith.constant 1.000000e+00 : f32
    %0 = vector.broadcast %cst : f32 to vector<128x1xf32>
    %1 = tpu.iota {dimensions = array<i32: 1>} : vector<1x128xi32>
    %2 = tpu.iota {dimensions = array<i32: 0>} : vector<16x1xi32>
    %c32_i32 = arith.constant 32 : i32
    %3 = arith.muli %arg0, %c32_i32 : i32
    %cst_0 = arith.constant 0.000000e+00 : f32
    %4 = vector.broadcast %cst_0 : f32 to vector<1x1xf32>
    %cst_1 = arith.constant 7.812500e-04 : f32
    %cst_2 = arith.constant 0.899999976 : f32
    %c0_i32 = arith.constant 0 : i32
    %c2_i32 = arith.constant 2 : i32
    %5 = arith.addi %c0_i32, %c2_i32 : i32
    %c1_i32 = arith.constant 1 : i32
    %6 = scf.for %arg4 = %c0_i32 to %5 step %c1_i32 iter_args(%arg5 = %4) -> (vector<1x1xf32>)  : i32 {
      %c16_i32 = arith.constant 16 : i32
      %11 = arith.muli %arg4, %c16_i32 : i32
      %12 = tpu.assume_multiple %11, 16 : i32
      %13 = arith.index_cast %12 : i32 to index
      %c0_6 = arith.constant 0 : index
      %14 = vector.load %arg1[%13, %c0_6] : memref<32x128xf32, #tpu.memory_space<vmem>>, vector<16x128xf32>
      %15 = arith.index_cast %12 : i32 to index
      %c0_7 = arith.constant 0 : index
      %16 = vector.load %arg2[%15, %c0_7] : memref<32x1xi32, #tpu.memory_space<vmem>>, vector<16x1xi32>
      %cst_8 = arith.constant dense<0xFF800000> : vector<16xf32>
      %17 = vector.multi_reduction <maximumf>, %14, %cst_8 [1] : vector<16x128xf32> to vector<16xf32>
      %18 = vector.shape_cast %17 : vector<16xf32> to vector<16x1xf32>
      %19 = vector.broadcast %18 : vector<16x1xf32> to vector<16x128xf32>
      %20 = arith.subf %14, %19 : vector<16x128xf32>
      %21 = math.exp %20 : vector<16x128xf32>
      %cst_9 = arith.constant dense<0.000000e+00> : vector<16x1xf32>
      %22 = tpu.matmul %21, %0, %cst_9 {dimension_numbers = #tpu.dot_dimension_numbers<[1], [0], [0], [1], [0, 0, 1, 1], [], []>} : vector<16x128xf32>, vector<128x1xf32>, vector<16x1xf32> -> vector<16x1xf32>
      %cst_10 = arith.constant dense<0.000000e+00> : vector<16x1xf32>
      %23 = tpu.matmul %14, %0, %cst_10 {dimension_numbers = #tpu.dot_dimension_numbers<[1], [0], [0], [1], [0, 0, 1, 1], [], []>} : vector<16x128xf32>, vector<128x1xf32>, vector<16x1xf32> -> vector<16x1xf32>
      %24 = vector.broadcast %1 : vector<1x128xi32> to vector<16x128xi32>
      %25 = vector.broadcast %16 : vector<16x1xi32> to vector<16x128xi32>
      %26 = arith.cmpi eq, %24, %25 : vector<16x128xi32>
      %cst_11 = arith.constant 0.000000e+00 : f32
      %27 = vector.broadcast %cst_11 : f32 to vector<16x128xf32>
      %28 = arith.select %26, %14, %27 : vector<16x128xi1>, vector<16x128xf32>
      %cst_12 = arith.constant dense<0.000000e+00> : vector<16x1xf32>
      %29 = tpu.matmul %28, %0, %cst_12 {dimension_numbers = #tpu.dot_dimension_numbers<[1], [0], [0], [1], [0, 0, 1, 1], [], []>} : vector<16x128xf32>, vector<128x1xf32>, vector<16x1xf32> -> vector<16x1xf32>
      %30 = math.log %22 : vector<16x1xf32>
      %31 = arith.addf %18, %30 : vector<16x1xf32>
      %cst_13 = arith.constant 1.280000e+02 : f32
      %32 = vector.broadcast %cst_13 : f32 to vector<16x1xf32>
      %33 = arith.mulf %32, %31 : vector<16x1xf32>
      %34 = arith.subf %23, %33 : vector<16x1xf32>
      %35 = arith.subf %29, %31 : vector<16x1xf32>
      %36 = vector.broadcast %cst_1 : f32 to vector<16x1xf32>
      %37 = arith.mulf %36, %34 : vector<16x1xf32>
      %38 = vector.broadcast %cst_2 : f32 to vector<16x1xf32>
      %39 = arith.mulf %38, %35 : vector<16x1xf32>
      %40 = arith.addf %37, %39 : vector<16x1xf32>
      %cst_14 = arith.constant 0.000000e+00 : f32
      %41 = vector.broadcast %cst_14 : f32 to vector<16x1xf32>
      %42 = arith.subf %41, %40 : vector<16x1xf32>
      %43 = arith.addi %3, %12 : i32
      %44 = vector.broadcast %43 : i32 to vector<16x1xi32>
      %45 = arith.addi %44, %2 : vector<16x1xi32>
      %c100_i32 = arith.constant 100 : i32
      %46 = vector.broadcast %c100_i32 : i32 to vector<16x1xi32>
      %47 = arith.cmpi slt, %45, %46 : vector<16x1xi32>
      %cst_15 = arith.constant 0.000000e+00 : f32
      %48 = vector.broadcast %cst_15 : f32 to vector<16x1xf32>
      %49 = arith.select %47, %42, %48 : vector<16x1xi1>, vector<16x1xf32>
      %50 = vector.shape_cast %49 : vector<16x1xf32> to vector<1x16x1xf32>
      %cst_16 = arith.constant dense<0.000000e+00> : vector<1xf32>
      %51 = vector.multi_reduction <add>, %50, %cst_16 [1, 2] : vector<1x16x1xf32> to vector<1xf32>
      %52 = vector.shape_cast %51 : vector<1xf32> to vector<1x1x1xf32>
      %53 = vector.extract %52[0, 0, 0] : f32 from vector<1x1x1xf32>
      %54 = vector.broadcast %53 : f32 to vector<1x1xf32>
      %55 = arith.addf %arg5, %54 : vector<1x1xf32>
      scf.yield %55 : vector<1x1xf32>
    }
    %c2_i32_3 = arith.constant 2 : i32
    %7 = vector.shape_cast %6 : vector<1x1xf32> to vector<1x1x1xf32>
    %8 = vector.shape_cast %7 : vector<1x1x1xf32> to vector<1x1x1xf32>
    %9 = vector.broadcast %8 : vector<1x1x1xf32> to vector<1x8x128xf32>
    %c0 = arith.constant 0 : index
    %c0_4 = arith.constant 0 : index
    %c0_5 = arith.constant 0 : index
    %10 = vector.load %arg3[%c0, %c0_4, %c0_5] : memref<1x8x128xf32, #tpu.memory_space<vmem>>, vector<1x8x128xf32>
    tpu.vector_store %arg3[%c0, %c0_4, %c0_5], %9 {strides = array<i32>} : memref<1x8x128xf32, #tpu.memory_space<vmem>>, vector<1x8x128xf32>,
    return
  }
  func.func @transform_0(%arg0: i32) -> (i32, i32) {
    %c0_i32 = arith.constant 0 : i32
    %c0_i32_0 = arith.constant 0 : i32
    return %arg0, %c0_i32 : i32, i32
  }
  func.func @transform_1(%arg0: i32) -> (i32, i32) {
    %c0_i32 = arith.constant 0 : i32
    %c0_i32_0 = arith.constant 0 : i32
    return %arg0, %c0_i32 : i32, i32
  }
  func.func @transform_2(%arg0: i32) -> (i32, i32, i32) {
    %c0_i32 = arith.constant 0 : i32
    %c0_i32_0 = arith.constant 0 : i32
    %c0_i32_1 = arith.constant 0 : i32
    return %arg0, %c0_i32, %c0_i32_0 : i32, i32, i32
  }
}

</mosaic_0001>

<bundles_post_ra>
// kernel: tpu_custom_call.1
= control target key start
LH: loop header
LB: loop body
LE: loop exit
PB: predicated region body
PF: predicated region fallthrough
CT: control target
= control target key end

     0   :  { %7 = vsyncpa [#allocation3], 0  ;;  %s1206_s0 = inlined_call_operand.vmem [shape: f32[100,128], index: 0, kind: input, shape index: {}]   ;;  %s1207_s1 = inlined_call_operand.vmem [shape: s32[100,1], index: 1, kind: input, shape index: {}]   ;;  %s1208_s2 = inlined_call_operand.hbm [shape: f32[4,8,128], index: 2, kind: output, shape index: {}]  }
   0x1   :  { %9 = vsyncpa [#allocation3 + $0x1], 0  ;;  %s1003_s9 = smov 0   ;;  %s1005_s10 = smov 0  }
   0x2   :  { %s1007_s11 = smov 0   ;;  %s1009_s12 = smov 0  }
   0x3 LB: > { %s1024_s13 = sadd.s32 4294967295, %s975_s12   ;;  %s612_s14 = sadd.s32 4294967294, %s975_s12   ;;  %s975_s12 = sphi %s1009_s12, %s1215_s12   ;;  %s971_s11 = sphi %s1007_s11, %s1214_s11   ;;  %s967_s10 = sphi %s1005_s10, %s1213_s10   ;;  %s963_s9 = sphi %s1003_s9, %s1212_s9  }
   0x4   : > { %s1028_s15 = sadd.s32 1, %s975_s12   ;;  %s74_s16 = sadd.s32 1, %s971_s11 }
   0x5   : > { %s71_s17 = ssub.s32 %s975_s12, %s1028_s15  ;;  %p84_p0 = scmp.ne.s32.totalorder %s971_s11, %s967_s10 }
   0x6   : > { %p72_p1 = scmp.eq.s32.totalorder %s71_s17, 0  ;;  %p85_p2 = scmp.eq.s32.totalorder %s1024_s13, 3 }
   0x7   : > { %p90_p3 = scmp.ne.s32.totalorder %s967_s10, %s963_s9  ;;  %p91_p4 = scmp.eq.s32.totalorder %s612_s14, 3 }
   0x8   : > { %s1039_s18 = scalar_select %p72_p1, %s971_s11, %s74_s16  }
   0x9   : > { %p1041_p5 = por %p85_p2, %p84_p0  ;;  %p1045_p6 = por %p91_p4, %p90_p3 }
   0xa   : > { %p615_p7 = scmp.ge.s32.totalorder %s975_s12, 1  ;;  %p143_p8 = scmp.lt.s32.totalorder %s975_s12, 5 }
   0xc   : > { %p144_p9 = pnand %p615_p7, %p143_p8 }
   0xd   : > { %s175_s21 = sand.u32 (!%p144_p9), 1, %s967_s10   ;;  %s617_s22 = sshll.u32 (!%p144_p9), %s1024_s13, 2  ;;  %v206_v0 = vlaneseq (!%p144_p9)  ;;  %v1076_v4 = vmov (!%p144_p9), 0.0  }
   0xe   : > { %147 = sbr.rel (%p144_p9) target bundleno = 668 (0x29c), region = 28  ;;  %s1055_s23 = sshll.u32 (!%p144_p9), %s175_s21, 3 }
   0xf   : > { %p183_p10 = scmp.lt.s32.totalorder (!%p144_p9), %s617_s22, 12  ;;  %v1057_v1 = vand.u32 (!%p144_p9), 127, %v206_v0  ;;  %v1059_v2 = vshrl.u32 (!%p144_p9), %v206_v0, 7  ;;  %s621_s24 = sshll.u32 (!%p144_p9), %s1024_s13, 5 }
  0x10   : > { %s177_s4 = scalar_lea.vmem (!%p144_p9), [#allocation2], %s1055_s23  ;;  %s1078_s5 = smov (!%p144_p9), 0  }
  0x11   : > { %v1063_v3 = vadd.s32 (!%p144_p9), 8, %v1059_v2 }
  0x15   : > { %s1217_s22 = smov (!%p183_p10, %s617_s22), 12 }
  0x16   : > { %s618_s25 = sshll.u32 %s1217_s22, 3 }
  0x17   : > { %s1068_s28 = scalar_lea.vmem %s1206_s0, %s618_s25  ;;  %s1073_s3 = scalar_lea.vmem %s1207_s1, %s618_s25 }
  0x18 LB: >> { %v985_v5 = vmov 0   ;;  %v986_v6 = vmov 1.0|1.0   ;;  %s1088_s6 = sshll.u32 %s983_s5, 4  ;;  %vm499_vm4 = vcmask 7168   ;;  %s217_s5 = sadd.s32 1, %s983_s5   ;;  %s983_s5 = sphi %s1078_s5, %s217_s5   ;;  %v979_v4 = vphi %v1076_v4, %v1211_v4  }
  0x19   : >> { %895 = vset.pattern.permute.xlu1 %v985_v5  ;;  %788 = vmatprep.subr.bf16.mxu0 %v986_v6  ;;  %s220_s7 = scalar_lea.vmem %s1068_s28, %s1088_s6  ;;  %s223_s8 = scalar_lea.vmem %s1073_s3, %s1088_s6 }
  0x1a   : >> { %789 = vmatpush3.bf16.msra.mxu0 %v986_v6  ;;  %804 = vmatprep.subr.bf16.mxu1 %v986_v6  ;;  %v221_v7 = vld [vmem:[%s220_s7] sm:$0xff]  ;;  %v1099_v9 = vld [vmem:[%s220_s7 + $0x8] sm:$0xff]  ;;  %s491_s14 = sadd.s32 %s1088_s6, %s621_s24  ;;  %p214_p11 = scmp.ge.s32.totalorder %s217_s5, 2  }
  0x1b   : >> { %790 = vmatprep.subr.bf16.mxu0 %v986_v6  ;;  %805 = vmatpush3.bf16.msra.mxu1 %v986_v6  ;;  %v224_v8 = vld [vmem:[%s223_s8] sm:$0xff]  ;;  %v225_v10 = vld [vmem:[%s223_s8 + $0x8] sm:$0xff]  ;;  %v492_v35 = vstv %s491_s14  ;;  %s626_s17 = sshll.u32 (%p214_p11), %s1024_s13, 7  ;;  %s529_s27 = sshll.u32 (%p214_p11), %s177_s4, 4  ;;  %s530_s27 = int_to_ptr.vmem [resolvable:$true] %s529_s27 }
  0x1c   : >> { %806 = vmatprep.subr.bf16.mxu1 %v986_v6  ;;  %896 = vset.pattern.permute.xlu0 %v985_v5  ;;  %v494_v40 = vadd.s32 %v492_v35, %v1063_v3  ;;  %v493_v43 = vadd.s32 %v492_v35, %v1059_v2  ;;  %s1166_s26 = scalar_lea.hbm (%p214_p11), %s1208_s2, %s626_s17  ;;  %s516_s29 = scalar_lea.sflag (%p214_p11), [#allocation3], %s175_s21 }
  0x1d   : >> { %226 = vmax.xlane.f32.xlu0 %v221_v7  ;;  %387 = vperm.xlu1 %895, %v224_v8   ;;  %s905_s30 = scalar_lea.vmem (%p214_p11), %s530_s27, 128  ;;  %s987_s24 = smov (%p214_p11), [#allocation2]  }
  0x1e   : >> { %791 = vmatpush3.bf16.msra.mxu0 %v986_v6  ;;  %750 = vmatprep.mubr.f32.mxu1 %v221_v7  ;;  %vm496_vm2 = vcmp.lt.s32.totalorder %v494_v40, 100  ;;  %vm495_vm3 = vcmp.lt.s32.totalorder %v493_v43, 100  ;;  %p906_p12 = scmp.ne.s32.totalorder (%p214_p11), %s530_s27, %s905_s30  ;;  %s909_s28 = sshll.u32 (%p214_p11), %s987_s24, 4  ;;  %s910_s28 = int_to_ptr.vmem [resolvable:$false] %s909_s28 }
  0x1f   : >> { %792 = vmatprep.subr.bf16.mxu0 %v986_v6  ;;  %807 = vmatpush3.bf16.msra.mxu1 %v986_v6  ;;  %s911_s3 = scalar_lea.vmem (%p214_p11), %s910_s28, 256  ;;  %p912_p1 = scmp.lt.s32.totalorder (%p214_p11), %s530_s27, %s910_s28 }
  0x20   : >> { %808 = vmatprep.subr.bf16.mxu1 %v986_v6  ;;  %p907_p13 = pnand (%p214_p11), %p906_p12, %p1041_p5  ;;  %p913_p2 = scmp.lt.s32.totalorder (%p214_p11), %s911_s3, %s905_s30 }
  0x21   : >> { %228 = vmax.xlane.f32.xlu0 %v1099_v9  ;;  %390 = vperm.xlu1 %895, %v225_v10  }
  0x22   : >> { %793 = vmatpush3.bf16.msra.mxu0 %v986_v6  ;;  %p908_p0 = pneg (%p214_p11), %p907_p13  ;;  %p914_p3 = por (%p214_p11), %p913_p2, %p912_p1 }
  0x23   : >> { %794 = vmatprep.subr.bf16.mxu0 %v986_v6  ;;  %809 = vmatpush3.bf16.msra.mxu1 %v986_v6 }
  0x24   : >> { %810 = vmatprep.subr.bf16.mxu1 %v986_v6  ;;  %p915_p4 = pnand (%p214_p11), %p914_p3, %p908_p0 }
  0x26   : >> { %795 = vmatpush3.bf16.msra.mxu0 %v986_v6 }
  0x27   : >> { %796 = vmatprep.subr.bf16.mxu0 %v986_v6  ;;  %811 = vmatpush3.bf16.msra.mxu1 %v986_v6 }
  0x28   : >> { %812 = vmatprep.subr.bf16.mxu1 %v986_v6 }
  0x2a   : >> { %797 = vmatpush3.bf16.msra.mxu0 %v986_v6 }
  0x2b   : >> { %798 = vmatprep.subr.bf16.mxu0 %v986_v6  ;;  %813 = vmatpush3.bf16.msra.mxu1 %v986_v6 }
  0x2c   : >> { %814 = vmatprep.subr.bf16.mxu1 %v986_v6 }
  0x2e   : >> { %799 = vmatpush3.bf16.msra.mxu0 %v986_v6 }
  0x2f   : >> { %800 = vmatprep.subr.bf16.mxu0 %v986_v6  ;;  %815 = vmatpush3.bf16.msra.mxu1 %v986_v6 }
  0x30   : >> { %816 = vmatprep.subr.bf16.mxu1 %v986_v6 }
  0x32   : >> { %801 = vmatpush3.bf16.msra.mxu0 %v986_v6 }
  0x33   : >> { %802 = vmatprep.subr.bf16.mxu0 %v986_v6  ;;  %817 = vmatpush3.bf16.msra.mxu1 %v986_v6 }
  0x34   : >> { %818 = vmatprep.subr.bf16.mxu1 %v986_v6 }
  0x36   : >> { %803 = vmatpush3.bf16.msra.mxu0 %v986_v6 }
  0x37   : >> { %820 = vmatprep.subr.bf16.mxu0 %v986_v6  ;;  %819 = vmatpush3.bf16.msra.mxu1 %v986_v6 }
  0x3a   : >> { %751 = vmatmul.mubr.f32.vlgmr.msra.gmra.mrb[0].mxu1 %v1099_v9 }
  0x9c   : >> { %v388_v18 = vpop.permute.xlu1 %387 }
  0x9d   : >> { %vm392_vm0 = vcmp.eq.s32.totalorder %v1057_v1, %v388_v18 }
  0xa0   : >> { %v391_v20 = vpop.permute.xlu1 %390 }
  0xa1   : >> { %vm393_vm1 = vcmp.eq.s32.totalorder %v1057_v1, %v391_v20 }
  0xaa   : >> { %v227_v11 = vpop.xlane.xlu0 %226 }
  0xab   : >> { %v230_v12 = vsub.f32 %v221_v7, %v227_v11 }
  0xad   : >> { %v232_v13 = vmul.f32 1.442695, %v230_v12 }
  0xae   : >> { %v229_v14 = vpop.xlane.xlu0 %228 }
  0xaf   : >> { %v231_v15 = vsub.f32 %v1099_v9, %v229_v14  ;;  %897 = vpow2.f32 %v232_v13 }
  0xb1   : >> { %v234_v16 = vmul.f32 1.442695, %v231_v15 }
  0xb3   : >> { %899 = vpow2.f32 %v234_v16 }
  0xb9   : >> { %v898_v17 = vpop.eup %897 }
  0xba   : >> { %715 = vmatprep.mubr.f32.mxu0 %v898_v17 }
  0xbd   : >> { %v900_v19 = vpop.eup %899 }
  0xbe   : >> { %716 = vmatmul.mubr.f32.vlgmr.msra.gmra.mrb[0].mxu0 %v900_v19 }
  0xbf   : >> { %821 = vmatpush3.bf16.msra.mxu0 %v986_v6  ;;  %785 = vmatprep.mubr.msk.f32.mxu0 %vm392_vm0, %v221_v7 }
  0xc0   : >> { %822 = vmatprep.subr.bf16.mxu0 %v986_v6 }
  0xc3   : >> { %823 = vmatpush3.bf16.msra.mxu0 %v986_v6 }
  0xc4   : >> { %824 = vmatprep.subr.bf16.mxu0 %v986_v6 }
  0xc7   : >> { %825 = vmatpush3.bf16.msra.mxu0 %v986_v6 }
  0xc8   : >> { %826 = vmatprep.subr.bf16.mxu0 %v986_v6 }
  0xcb   : >> { %827 = vmatpush3.bf16.msra.mxu0 %v986_v6 }
  0xcc   : >> { %828 = vmatprep.subr.bf16.mxu0 %v986_v6 }
  0xcf   : >> { %829 = vmatpush3.bf16.msra.mxu0 %v986_v6 }
  0xd0   : >> { %830 = vmatprep.subr.bf16.mxu0 %v986_v6 }
  0xd3   : >> { %831 = vmatpush3.bf16.msra.mxu0 %v986_v6 }
  0xd4   : >> { %832 = vmatprep.subr.bf16.mxu0 %v986_v6 }
  0xd7   : >> { %833 = vmatpush3.bf16.msra.mxu0 %v986_v6 }
  0xd8   : >> { %834 = vmatprep.subr.bf16.mxu0 %v986_v6 }
  0xdb   : >> { %835 = vmatpush3.bf16.msra.mxu0 %v986_v6 }
  0xde   : >> { %786 = vmatmul.mubr.msk.f32.vlgmr.msra.gmra.mrb[2].mxu0 %vm393_vm1, %v1099_v9 }
 0x10d   : >> { %v752_v21 = vpop.f32.mrb[0].mxu1 }
 0x10e   : >> { %v377_v22 = vpop.f32.mrb[1].mxu1 }
 0x191   : >> { %v717_v23 = vpop.f32.mrb[0].mxu0 }
 0x192   : >> { %901 = vlog2.f32 %v717_v23  ;;  %v302_v24 = vpop.f32.mrb[1].mxu0 }
 0x193   : >> { %903 = vlog2.f32 %v302_v24 }
 0x19c   : >> { %v902_v25 = vpop.eup %901 }
 0x19d   : >> { %v904_v26 = vpop.eup %903  ;;  %v474_v27 = vmul.f32 0.6931472, %v902_v25 }
 0x19e   : >> { %v472_v28 = vmul.f32 0.6931472, %v904_v26 }
 0x19f   : >> { %v476_v29 = vadd.f32 %v474_v27, %v229_v14 }
 0x1a0   : >> { %v475_v30 = vadd.f32 %v472_v28, %v227_v11 }
 0x1a1   : >> { %v478_v31 = vmul.f32 128.0, %v476_v29 }
 0x1a2   : >> { %v477_v32 = vmul.f32 128.0, %v475_v30 }
 0x1a3   : >> { %v480_v33 = vsub.f32 %v752_v21, %v478_v31 }
 0x1a4   : >> { %v479_v34 = vsub.f32 %v377_v22, %v477_v32 }
 0x1a5   : >> { %v484_v41 = vmul.f32 0.00078125, %v480_v33 }
 0x1a6   : >> { %v483_v44 = vmul.f32 0.00078125, %v479_v34 }
 0x1b1   : >> { %v787_v36 = vpop.f32.mrb[2].mxu0 }
 0x1b2   : >> { %v482_v37 = vsub.f32 %v787_v36, %v476_v29  ;;  %v462_v38 = vpop.f32.mrb[3].mxu0 }
 0x1b3   : >> { %v481_v39 = vsub.f32 %v462_v38, %v475_v30 }
 0x1b4   : >> { %v486_v42 = vmul.f32 0.9, %v482_v37 }
 0x1b5   : >> { %v485_v45 = vmul.f32 0.9, %v481_v39 }
 0x1b6   : >> { %v488_v46 = vadd.f32 %v486_v42, %v484_v41 }
 0x1b7   : >> { %v487_v47 = vadd.f32 %v485_v45, %v483_v44 }
 0x1b8   : >> { %v490_v48 = vsub.f32 0.0, %v488_v46 }
 0x1b9   : >> { %v489_v49 = vsub.f32 0.0, %v487_v47 }
 0x1ba   : >> { %v498_v50 = vsel %vm496_vm2, %v490_v48, 0.0 }
 0x1bb   : >> { %v497_v51 = vsel %vm495_vm3, %v489_v49, 0.0  ;;  %v501_v52 = vsel %vm499_vm4, %v498_v50, 0.0 }
 0x1bc   : >> { %v500_v53 = vsel %vm499_vm4, %v497_v51, 0.0 }
 0x1bd   : >> { %v502_v54 = vadd.f32 %v501_v52, %v500_v53 }
 0x1bf   : >> { %503 = vadd.xlane.f32.xlu0 %v502_v54 }
 0x24c   : >> { %v504_v55 = vpop.xlane.xlu0 %503 }
 0x24d   : >> { %v505_v56 = vrot.slane %v504_v55, 4 }
 0x24f   : >> { %v506_v57 = vadd.f32 %v505_v56, %v504_v55 }
 0x251   : >> { %v507_v58 = vrot.slane %v506_v57, 2 }
 0x253   : >> { %v508_v59 = vadd.f32 %v507_v58, %v506_v57 }
 0x255   : >> { %v509_v60 = vrot.slane %v508_v59, 1 }
 0x257   : >> { %v510_v61 = vadd.f32 %v509_v60, %v508_v59 }
 0x259   : >> { %836 = vpush %v510_v61 }
 0x288   : > { %216 = sbr.rel (!%p214_p11) target bundleno = 24 (0x18), region = 75 }
 0x28a   : >> { %s837_s16 = spop %836 }
 0x28b   : >> { %v512_v62 = vstv %s837_s16 }
 0x28c   : >> { %v513_v63 = vadd.f32 %v979_v4, %v512_v62  }
 0x28e   : >> { %v1211_v4 = vmov %v513_v63  ;;  %514 = vst [vmem:[%s177_s4] sm:$0xff] (%p214_p11), %v513_v63 }
 0x28f   : > { %918 = shalt.err (!%p915_p4)
}
 0x290   : > { %s919_s13 = scalar_lea.hbm %s1166_s26, 128  ;;  %s923_s4 = scalar_lea.hbm %s1208_s2, 512 }
 0x291   : > { %p920_p7 = scmp.ne.s32.totalorder %s1166_s26, %s919_s13  ;;  %p924_p10 = scmp.lt.u32.totalorder %s1166_s26, %s1208_s2 }
 0x292   : > { %p925_p11 = scmp.lt.u32.totalorder %s923_s4, %s919_s13  ;;  %p927_p13 = scmp.lt.u32.totalorder %s919_s13, %s1166_s26 }
 0x293   : > { %p921_p8 = pnand %p920_p7, %p1041_p5 }
 0x294   : > { %p926_p12 = por %p925_p11, %p924_p10 }
 0x295   : > { %p922_p9 = pneg %p921_p8 }
 0x296   : > { %p928_p0 = por %p927_p13, %p926_p12 }
 0x298   : > { %p929_p1 = pnand %p928_p0, %p922_p9 }
 0x29a   : > { %932 = shalt.err (!%p929_p1)
}
 0x29b   : > { %838 = dma.vmem_to_hbm [thread:$0]  (%p1041_p5), %s530_s27, 128, %s1166_s26, %s516_s29  }
 0x29c PF: > { %p844_p2 = scmp.ge.s32.totalorder %s975_s12, 2  ;;  %s541_s7 = sand.u32 1, %s963_s9  }
 0x29d   : > { %s542_s8 = scalar_lea.sflag [#allocation3], %s541_s7 }
 0x29e   : > { %p841_p3 = pnand %p844_p2, %p1045_p6 }
 0x2a0   : > { %958 = dma.done.wait (!%p841_p3), %s542_s8, 128  }
 0x2a1   : > { %960 = vsyncadd (!%p841_p3), %s542_s8, 4294967168  ;;  %p12_p4 = scmp.ge.s32.totalorder %s1028_s15, 6   ;;  %s1212_s9 = smov %s967_s10 }
 0x2a2   : > { %s1213_s10 = smov %s971_s11  ;;  %s1214_s11 = smov %s1039_s18 }
 0x2a3   : > { %s1215_s12 = smov %s1028_s15  ;;  %14 = sbr.rel (!%p12_p4) target bundleno = 3 (0x3), region = 86 }
 0x2aa   :  { %547 = vsyncpa [#allocation3], 1 }
 0x2ab   :  { %549 = vsyncpa [#allocation3 + $0x1], 1 }

</bundles_post_ra>
